<compile_context>
chip_gen: v7x
topology: tpu7x:2x2x1
jax: 0.10.0
libtpu: 0.0.40
codegen_flags: <defaults>
</compile_context>

<pallas_src>
import functools

import jax
import jax.numpy as jnp
from jax.experimental import pallas as pl
from jax.experimental.pallas import tpu as pltpu

_LANES = 128
_PAD_LOGIT = -30000.0  # sigmoid(pad)=0, softplus(pad)=0 -> zero contribution


def _round_up(x: int, m: int) -> int:
    return ((x + m - 1) // m) * m


def _focal_loss_kernel(logit_ref, hot_ref, out_ref, *, alpha: float, gamma: float):
    x = logit_ref[...].astype(jnp.float32)        # (R, 128) logits
    t = hot_ref[...].astype(jnp.float32)          # (R, 128) one-hot in {0, 1}

    # z = x for the "negative" branch, -x for the "positive" branch, so that
    #   1 - pt = sigmoid(z)      (pt = p*t + (1-p)*(1-t), p = sigmoid(x))
    #   bce    = softplus(z)     (= -log(pt); torch clamps the log at -100)
    z = x * (1.0 - 2.0 * t)

    # Shared-exp formulation: one exp, one divide, one log per element.
    em = jnp.exp(-jnp.abs(z))
    den = 1.0 + em
    s_pos = 1.0 / den                              # sigmoid(|z|)
    one_minus_pt = jnp.where(z >= 0.0, s_pos, 1.0 - s_pos)
    bce = jnp.minimum(jnp.maximum(z, 0.0) + jnp.log(den), 100.0)

    # alpha balancing + focal modulation (1 - pt)**gamma
    w = (1.0 - alpha) + (2.0 * alpha - 1.0) * t
    if gamma == 2.0:
        focal = one_minus_pt * one_minus_pt        # VALU square, no EUP power
    elif gamma == 1.0:
        focal = one_minus_pt
    elif gamma == 0.0:
        focal = jnp.ones_like(one_minus_pt)
    else:
        focal = jnp.power(one_minus_pt, gamma)

    contrib = (w * focal) * bce                    # (R, 128), >= 0, padded -> 0

    # Lane-dense (8, 128) partial-sum slab per block (sublane-group reduce only;
    # the cheap cross-lane/final reduce happens once in the wrapper).
    r, lanes = contrib.shape
    out_ref[...] = jnp.sum(contrib.reshape(r // 8, 8, lanes), axis=0)


def focal_loss(prediction: jax.Array, target: jax.Array,
               alpha: float = 0.25, gamma: float = 2.0,
               *, block_rows: int = 2048) -> jax.Array:
    """prediction: (N, C) float logits (any float dtype); target: (N,) int class ids."""
    if prediction.ndim != 2:
        raise ValueError("prediction must have shape (N, C)")
    n = prediction.shape[0]

    pred = prediction
    if pred.shape[1] == 1:
        # torch: cat([1 - sigmoid(x), sigmoid(x)], axis=1) == sigmoid(cat([-x, x]))
        pred = jnp.concatenate([-pred, pred], axis=1)
    c = pred.shape[1]

    tgt = target.astype(jnp.int32).reshape(n)
    # one-hot mask (eye(C)[target]) built lane-dense in the wrapper, int8 to
    # keep HBM traffic at 1 byte/element.
    hot = (jax.lax.broadcasted_iota(jnp.int32, (n, c), 1) == tgt[:, None]).astype(jnp.int8)

    # Flatten to a lane-dense (rows, 128) layout; pad so padded elements
    # contribute exactly zero to the partial sums.
    total = n * c
    rows = -(-total // _LANES)
    blk = min(block_rows, _round_up(rows, 32))     # multiple of 32 -> ok for i8/bf16/f32 tiles
    rows_padded = _round_up(rows, blk)
    padded = rows_padded * _LANES
    num_blocks = rows_padded // blk

    flat_pred = jnp.pad(pred.reshape(-1), (0, padded - total),
                        constant_values=_PAD_LOGIT).reshape(rows_padded, _LANES)
    flat_hot = jnp.pad(hot.reshape(-1), (0, padded - total),
                       constant_values=0).reshape(rows_padded, _LANES)

    kernel = functools.partial(_focal_loss_kernel,
                               alpha=float(alpha), gamma=float(gamma))
    partials = pl.pallas_call(
        kernel,
        out_shape=jax.ShapeDtypeStruct((num_blocks * 8, _LANES), jnp.float32),
        grid=(num_blocks,),
        in_specs=[
            pl.BlockSpec((blk, _LANES), lambda i: (i, 0)),   # logits (native dtype)
            pl.BlockSpec((blk, _LANES), lambda i: (i, 0)),   # one-hot mask (int8)
        ],
        out_specs=pl.BlockSpec((8, _LANES), lambda i: (i, 0)),
        compiler_params=pltpu.CompilerParams(
            dimension_semantics=("parallel",),
            vmem_limit_bytes=32 * 1024 * 1024,
        ),
    )(flat_pred, flat_hot)

    # reduction='mean' over the real (un-padded) N*C elements, applied once.
    return jnp.sum(partials) / jnp.float32(float(n) * float(c))


def _reference(prediction, target, alpha=0.25, gamma=2.0):
    # Plain-JAX mirror of the PyTorch module (forward pass), for sanity check.
    p = jax.nn.sigmoid(prediction.astype(jnp.float32))
    if p.shape[1] == 1:
        p = jnp.concatenate([1.0 - p, p], axis=1)
    c = p.shape[1]
    t = jnp.eye(c, dtype=jnp.float32)[target.astype(jnp.int32)]
    pt = p * t + (1.0 - p) * (1.0 - t)
    w = (alpha * t + (1.0 - alpha) * (1.0 - t)) * (1.0 - pt) ** gamma
    bce = -(t * jnp.maximum(jnp.log(p), -100.0)
            + (1.0 - t) * jnp.maximum(jnp.log(1.0 - p), -100.0))
    return jnp.mean(w * bce)


if __name__ == "__main__":
    key = jax.random.PRNGKey(0)
    k1, k2, k3 = jax.random.split(key, 3)

    # multi-class case: (N, C) logits + (N,) class indices
    N, C = 8, 4
    prediction = jax.random.normal(k1, (N, C), dtype=jnp.float32)
    target = jax.random.randint(k2, (N,), 0, C, dtype=jnp.int32)

    loss = focal_loss(prediction, target, alpha=0.25, gamma=2.0)
    jax.block_until_ready(loss)
    ref = _reference(prediction, target)
    assert jnp.allclose(loss, ref, rtol=1e-5, atol=1e-6), (loss, ref)

    # binary case: C == 1 logits path (torch's cat([1-p, p]) branch)
    pred_bin = jax.random.normal(k3, (N, 1), dtype=jnp.float32)
    tgt_bin = jax.random.randint(k2, (N,), 0, 2, dtype=jnp.int32)
    loss_bin = focal_loss(pred_bin, tgt_bin)
    jax.block_until_ready(loss_bin)
    ref_bin = _reference(pred_bin, tgt_bin)
    assert jnp.allclose(loss_bin, ref_bin, rtol=1e-5, atol=1e-6), (loss_bin, ref_bin)

    print("KERNEL_OK")
</pallas_src>

<mosaic_0001>
module attributes {stable_mosaic.version = 11 : i64} {
  func.func @_focal_loss_kernel(%arg0: i32, %arg1: memref<32x128xf32, #tpu.memory_space<vmem>>, %arg2: memref<32x128xi8, #tpu.memory_space<vmem>>, %arg3: memref<8x128xf32, #tpu.memory_space<vmem>>) attributes {dimension_semantics = [#tpu.dimension_semantics<parallel>], iteration_bounds = array<i64: 1>, scalar_prefetch = 0 : i64, scratch_operands = 0 : i64, tpu.core_type = #tpu.core_type<tc>, window_params = [{transform_indices = @transform_0, window_bounds = array<i64: 32, 128>}, {transform_indices = @transform_1, window_bounds = array<i64: 32, 128>}, {transform_indices = @transform_2, window_bounds = array<i64: 8, 128>}]} {
    %c0 = arith.constant 0 : index
    %c0_0 = arith.constant 0 : index
    %0 = vector.load %arg1[%c0, %c0_0] : memref<32x128xf32, #tpu.memory_space<vmem>>, vector<32x128xf32>
    %c0_1 = arith.constant 0 : index
    %c0_2 = arith.constant 0 : index
    %1 = vector.load %arg2[%c0_1, %c0_2] : memref<32x128xi8, #tpu.memory_space<vmem>>, vector<32x128xi8>
    %2 = arith.sitofp %1 : vector<32x128xi8> to vector<32x128xf32>
    %cst = arith.constant 2.000000e+00 : f32
    %3 = vector.broadcast %cst : f32 to vector<32x128xf32>
    %4 = arith.mulf %3, %2 : vector<32x128xf32>
    %cst_3 = arith.constant 1.000000e+00 : f32
    %5 = vector.broadcast %cst_3 : f32 to vector<32x128xf32>
    %6 = arith.subf %5, %4 : vector<32x128xf32>
    %7 = arith.mulf %0, %6 : vector<32x128xf32>
    %8 = math.absf %7 : vector<32x128xf32>
    %cst_4 = arith.constant 0.000000e+00 : f32
    %9 = vector.broadcast %cst_4 : f32 to vector<32x128xf32>
    %10 = arith.subf %9, %8 : vector<32x128xf32>
    %11 = math.exp %10 : vector<32x128xf32>
    %cst_5 = arith.constant 1.000000e+00 : f32
    %12 = vector.broadcast %cst_5 : f32 to vector<32x128xf32>
    %13 = arith.addf %12, %11 : vector<32x128xf32>
    %cst_6 = arith.constant 1.000000e+00 : f32
    %14 = vector.broadcast %cst_6 : f32 to vector<32x128xf32>
    %15 = arith.divf %14, %13 : vector<32x128xf32>
    %cst_7 = arith.constant 0.000000e+00 : f32
    %16 = vector.broadcast %cst_7 : f32 to vector<32x128xf32>
    %17 = arith.cmpf oge, %7, %16 : vector<32x128xf32>
    %cst_8 = arith.constant 1.000000e+00 : f32
    %18 = vector.broadcast %cst_8 : f32 to vector<32x128xf32>
    %19 = arith.subf %18, %15 : vector<32x128xf32>
    %20 = arith.select %17, %15, %19 : vector<32x128xi1>, vector<32x128xf32>
    %cst_9 = arith.constant 0.000000e+00 : f32
    %21 = vector.broadcast %cst_9 : f32 to vector<32x128xf32>
    %22 = arith.maximumf %7, %21 : vector<32x128xf32>
    %23 = math.log %13 : vector<32x128xf32>
    %24 = arith.addf %22, %23 : vector<32x128xf32>
    %cst_10 = arith.constant 1.000000e+02 : f32
    %25 = vector.broadcast %cst_10 : f32 to vector<32x128xf32>
    %26 = arith.minimumf %24, %25 : vector<32x128xf32>
    %cst_11 = arith.constant -5.000000e-01 : f32
    %27 = vector.broadcast %cst_11 : f32 to vector<32x128xf32>
    %28 = arith.mulf %27, %2 : vector<32x128xf32>
    %cst_12 = arith.constant 7.500000e-01 : f32
    %29 = vector.broadcast %cst_12 : f32 to vector<32x128xf32>
    %30 = arith.addf %29, %28 : vector<32x128xf32>
    %31 = arith.mulf %20, %20 : vector<32x128xf32>
    %32 = arith.mulf %30, %31 : vector<32x128xf32>
    %33 = arith.mulf %32, %26 : vector<32x128xf32>
    %34 = vector.shape_cast %33 : vector<32x128xf32> to vector<4x8x128xf32>
    %cst_13 = arith.constant dense<0.000000e+00> : vector<8x128xf32>
    %35 = vector.multi_reduction <add>, %34, %cst_13 [0] : vector<4x8x128xf32> to vector<8x128xf32>
    %c0_14 = arith.constant 0 : index
    %c0_15 = arith.constant 0 : index
    %36 = vector.load %arg3[%c0_14, %c0_15] : memref<8x128xf32, #tpu.memory_space<vmem>>, vector<8x128xf32>
    tpu.vector_store %arg3[%c0_14, %c0_15], %35 {strides = array<i32>} : memref<8x128xf32, #tpu.memory_space<vmem>>, vector<8x128xf32>,
    return
  }
  func.func @transform_0(%arg0: i32) -> (i32, i32) {
    %c0_i32 = arith.constant 0 : i32
    %c0_i32_0 = arith.constant 0 : i32
    return %arg0, %c0_i32 : i32, i32
  }
  func.func @transform_1(%arg0: i32) -> (i32, i32) {
    %c0_i32 = arith.constant 0 : i32
    %c0_i32_0 = arith.constant 0 : i32
    return %arg0, %c0_i32 : i32, i32
  }
  func.func @transform_2(%arg0: i32) -> (i32, i32) {
    %c0_i32 = arith.constant 0 : i32
    %c0_i32_0 = arith.constant 0 : i32
    return %arg0, %c0_i32 : i32, i32
  }
}

</mosaic_0001>

<bundles_post_ra>
// kernel: tpu_custom_call.1
= control target key start
LH: loop header
LB: loop body
LE: loop exit
PB: predicated region body
PF: predicated region fallthrough
CT: control target
= control target key end

     0   :  { %7 = vsyncpa [#allocation3], 0  ;;  %s342_s0 = inlined_call_operand.hbm [shape: f32[32,128], index: 0, kind: input, shape index: {}]   ;;  %s343_s1 = inlined_call_operand.hbm [shape: s8[32,128], index: 1, kind: input, shape index: {}]   ;;  %s344_s2 = inlined_call_operand.hbm [shape: f32[8,128], index: 2, kind: output, shape index: {}]  }
   0x1   :  { %8 = vsyncpa [#allocation6], 0 }
   0x2   :  { %9 = vsyncpa [#allocation4], 0  ;;  %s264_s9 = smov [#allocation2]   ;;  %s192_s13 = scalar_lea.hbm %s342_s0, 512 }
   0x3   :  { %s15_s10 = sshll.u32 %s264_s9, 4  ;;  %p193_p0 = scmp.ne.s32.totalorder %s342_s0, %s192_s13  ;;  %s16_s10 = int_to_ptr.vmem [resolvable:$true] %s15_s10 }
   0x4   :  { %p196_p1 = scmp.lt.u32.totalorder %s192_s13, %s342_s0 }
   0x6   :  { %p198_p2 = pnand %p196_p1, %p193_p0 }
   0x8   :  { %201 = shalt.err (!%p198_p2)
}
   0x9   :  { %s202_s18 = scalar_lea.vmem %s16_s10, 512  ;;  %p207_p4 = scmp.lt.s32.totalorder %s16_s10, %s16_s10 }
   0xa   :  { %p203_p3 = scmp.ne.s32.totalorder %s16_s10, %s202_s18  ;;  %p208_p5 = scmp.lt.s32.totalorder %s202_s18, %s202_s18 }
   0xc   :  { %p209_p6 = por %p208_p5, %p207_p4 }
   0xe   :  { %p210_p7 = pnand %p209_p6, %p203_p3 }
  0x10   :  { %213 = shalt.err (!%p210_p7)
}
  0x11   :  { %s265_s19 = smov 128   ;;  %s266_s20 = smov 8  }
  0x12   :  { %21 = dma.hbm_to_vmem [thread:$0]  %s342_s0, 512, %s16_s10, [#allocation3], %s265_s19, %s265_s19, %s266_s20  }
  0x13   :  { %s267_s23 = smov [#allocation5]   ;;  %s214_s27 = scalar_lea.hbm %s343_s1, 128 }
  0x14   :  { %s28_s24 = sshll.u32 %s267_s23, 4  ;;  %p215_p8 = scmp.ne.s32.totalorder %s343_s1, %s214_s27  ;;  %s29_s24 = int_to_ptr.vmem [resolvable:$true] %s28_s24 }
  0x15   :  { %p218_p9 = scmp.lt.u32.totalorder %s214_s27, %s343_s1 }
  0x17   :  { %p220_p10 = pnand %p218_p9, %p215_p8 }
  0x19   :  { %223 = shalt.err (!%p220_p10)
}
  0x1a   :  { %s224_s4 = scalar_lea.vmem %s29_s24, 128  ;;  %p229_p12 = scmp.lt.s32.totalorder %s29_s24, %s29_s24 }
  0x1b   :  { %p225_p11 = scmp.ne.s32.totalorder %s29_s24, %s224_s4  ;;  %p230_p13 = scmp.lt.s32.totalorder %s224_s4, %s224_s4 }
  0x1d   :  { %p231_p0 = por %p230_p13, %p229_p12 }
  0x1f   :  { %p232_p1 = pnand %p231_p0, %p225_p11 }
  0x21   :  { %235 = shalt.err (!%p232_p1)
}
  0x22   :  { %31 = dma.hbm_to_vmem [thread:$0]  %s343_s1, 128, %s29_s24, [#allocation6]  }
  0x23   :  { %258 = dma.done.wait [#allocation3], 512  }
  0x24   :  { %259 = vsyncadd [#allocation3], 4294966784 }
  0x25   :  { %260 = dma.done.wait [#allocation6], 128  }
  0x26   :  { %261 = vsyncadd [#allocation6], 4294967168  ;;  %v42_v0 = vld [vmem:[#allocation5] sm:$0xff]  ;;  %v39_v14 = vld [vmem:[#allocation2 + $0x8] sm:$0xff]  ;;  %s268_s1 = smov [#allocation7]  }
  0x27   :  { %v43_v1 = vunpack.c.0.s8 %v42_v0  ;;  %v44_v2 = vunpack.c.1.s8 %v42_v0  ;;  %v45_v3 = vunpack.c.2.s8 %v42_v0  ;;  %v46_v4 = vunpack.c.3.s8 %v42_v0  ;;  %v38_v9 = vld [vmem:[#allocation2] sm:$0xff]  ;;  %v40_v15 = vld [vmem:[#allocation2 + $0x10] sm:$0xff]  ;;  %v41_v16 = vld [vmem:[#allocation2 + $0x18] sm:$0xff]  ;;  %s153_s6 = sshll.u32 %s268_s1, 4  ;;  %s154_s6 = int_to_ptr.vmem [resolvable:$true] %s153_s6 }
  0x28   :  { %s236_s7 = scalar_lea.vmem %s154_s6, 128  ;;  %p241_p3 = scmp.lt.s32.totalorder %s154_s6, %s154_s6 }
  0x29   :  { %v47_v5 = vcvt.s32.f32 %v43_v1  ;;  %v48_v6 = vcvt.s32.f32 %v44_v2  ;;  %v49_v7 = vcvt.s32.f32 %v45_v3  ;;  %v50_v8 = vcvt.s32.f32 %v46_v4  ;;  %p237_p2 = scmp.ne.s32.totalorder %s154_s6, %s236_s7  ;;  %p242_p4 = scmp.lt.s32.totalorder %s236_s7, %s236_s7 }
  0x2b   :  { %v51_v10 = vmul.f32 2.0, %v47_v5  ;;  %v52_v11 = vmul.f32 2.0, %v48_v6  ;;  %v53_v12 = vmul.f32 2.0, %v49_v7  ;;  %v54_v13 = vmul.f32 2.0, %v50_v8  ;;  %p243_p5 = por %p242_p4, %p241_p3 }
  0x2c   :  { %v123_v45 = vmul.f32 -0.5, %v47_v5  ;;  %v124_v46 = vmul.f32 -0.5, %v48_v6  ;;  %v125_v47 = vmul.f32 -0.5, %v49_v7  ;;  %v126_v48 = vmul.f32 -0.5, %v50_v8 }
  0x2d   :  { %v55_v17 = vsub.f32 1.0, %v51_v10  ;;  %v56_v18 = vsub.f32 1.0, %v52_v11  ;;  %v57_v19 = vsub.f32 1.0, %v53_v12  ;;  %v58_v20 = vsub.f32 1.0, %v54_v13  ;;  %p244_p6 = pnand %p243_p5, %p237_p2 }
  0x2e   :  { %v127_v52 = vadd.f32 0.75, %v123_v45  ;;  %v128_v53 = vadd.f32 0.75, %v124_v46  ;;  %v129_v56 = vadd.f32 0.75, %v125_v47  ;;  %v130_v57 = vadd.f32 0.75, %v126_v48 }
  0x2f   :  { %v308_v21 = vmul.f32 %v55_v17, %v38_v9  ;;  %v310_v22 = vmul.f32 %v56_v18, %v39_v14  ;;  %v312_v23 = vmul.f32 %v57_v19, %v40_v15  ;;  %v314_v24 = vmul.f32 %v58_v20, %v41_v16 }
  0x31   :  { %v63_v25 = vand.u32 2147483647, %v308_v21  ;;  %v64_v26 = vand.u32 2147483647, %v310_v22  ;;  %v65_v27 = vand.u32 2147483647, %v312_v23 }
  0x32   :  { %v66_v28 = vand.u32 2147483647, %v314_v24  ;;  %vm91_vm0 = vcmp.ge.f32.partialorder %v308_v21, 0.0  ;;  %vm92_vm1 = vcmp.ge.f32.partialorder %v310_v22, 0.0  ;;  %vm93_vm2 = vcmp.ge.f32.partialorder %v312_v23, 0.0 }
  0x33   :  { %v67_v29 = vsub.f32 0.0, %v63_v25  ;;  %v68_v30 = vsub.f32 0.0, %v64_v26  ;;  %v69_v31 = vsub.f32 0.0, %v65_v27  ;;  %vm94_vm3 = vcmp.ge.f32.partialorder %v314_v24, 0.0 }
  0x34   :  { %v70_v32 = vsub.f32 0.0, %v66_v28  ;;  %v103_v61 = vmax.f32 %v308_v21, 0.0  ;;  %v104_v1 = vmax.f32 %v310_v22, 0.0  ;;  %v105_v5 = vmax.f32 %v312_v23, 0.0 }
  0x35   :  { %v71_v33 = vmul.f32 1.442695, %v67_v29  ;;  %v73_v34 = vmul.f32 1.442695, %v68_v30  ;;  %v75_v35 = vmul.f32 1.442695, %v69_v31 }
  0x36   :  { %v77_v36 = vmul.f32 1.442695, %v70_v32  ;;  %v106_v10 = vmax.f32 %v314_v24, 0.0 }
  0x37   :  { %168 = vpow2.f32 %v71_v33 }
  0x38   :  { %170 = vpow2.f32 %v73_v34 }
  0x39   :  { %172 = vpow2.f32 %v75_v35 }
  0x3a   :  { %174 = vpow2.f32 %v77_v36 }
  0x41   :  { %v169_v37 = vpop.eup %168 }
  0x42   :  { %v171_v38 = vpop.eup %170  ;;  %v79_v39 = vadd.f32 1.0, %v169_v37 }
  0x43   :  { %v173_v40 = vpop.eup %172  ;;  %v80_v41 = vadd.f32 1.0, %v171_v38 }
  0x44   :  { %v175_v42 = vpop.eup %174  ;;  %v81_v43 = vadd.f32 1.0, %v173_v40  ;;  %176 = vrcp.f32 %v79_v39 }
  0x45   :  { %v82_v44 = vadd.f32 1.0, %v175_v42  ;;  %178 = vrcp.f32 %v80_v41 }
  0x46   :  { %180 = vrcp.f32 %v81_v43 }
  0x47   :  { %182 = vrcp.f32 %v82_v44 }
  0x48   :  { %184 = vlog2.f32 %v79_v39 }
  0x49   :  { %186 = vlog2.f32 %v80_v41 }
  0x4a   :  { %188 = vlog2.f32 %v81_v43 }
  0x4b   :  { %190 = vlog2.f32 %v82_v44 }
  0x4e   :  { %v177_v49 = vpop.eup %176 }
  0x4f   :  { %v179_v50 = vpop.eup %178  ;;  %v95_v51 = vsub.f32 1.0, %v177_v49 }
  0x50   :  { %v181_v54 = vpop.eup %180  ;;  %v96_v55 = vsub.f32 1.0, %v179_v50 }
  0x51   :  { %v183_v58 = vpop.eup %182  ;;  %v97_v59 = vsub.f32 1.0, %v181_v54  ;;  %v99_v60 = vsel %vm91_vm0, %v177_v49, %v95_v51 }
  0x52   :  { %v185_v62 = vpop.eup %184  ;;  %v98_v63 = vsub.f32 1.0, %v183_v58  ;;  %v100_v0 = vsel %vm92_vm1, %v179_v50, %v96_v55  ;;  %v131_v2 = vmul.f32 %v99_v60, %v99_v60 }
  0x53   :  { %v187_v3 = vpop.eup %186  ;;  %v101_v4 = vsel %vm93_vm2, %v181_v54, %v97_v59  ;;  %v108_v6 = vmul.f32 0.6931472, %v185_v62  ;;  %v132_v7 = vmul.f32 %v100_v0, %v100_v0 }
  0x54   :  { %v189_v8 = vpop.eup %188  ;;  %v102_v9 = vsel %vm94_vm3, %v183_v58, %v98_v63  ;;  %v110_v11 = vmul.f32 0.6931472, %v187_v3  ;;  %v133_v12 = vmul.f32 %v101_v4, %v101_v4  ;;  %v135_v17 = vmul.f32 %v131_v2, %v127_v52 }
  0x55   :  { %v191_v13 = vpop.eup %190  ;;  %v112_v14 = vmul.f32 0.6931472, %v189_v8  ;;  %v115_v15 = vadd.f32 %v108_v6, %v103_v61  ;;  %v134_v16 = vmul.f32 %v102_v9, %v102_v9  ;;  %v136_v20 = vmul.f32 %v132_v7, %v128_v53 }
  0x56   :  { %v114_v18 = vmul.f32 0.6931472, %v191_v13  ;;  %v116_v19 = vadd.f32 %v110_v11, %v104_v1  ;;  %v137_v25 = vmul.f32 %v133_v12, %v129_v56 }
  0x57   :  { %v117_v21 = vadd.f32 %v112_v14, %v105_v5  ;;  %v119_v22 = vmin.f32 %v115_v15, 100.0  ;;  %v138_v27 = vmul.f32 %v134_v16, %v130_v57 }
  0x58   :  { %v118_v23 = vadd.f32 %v114_v18, %v106_v10  ;;  %v120_v26 = vmin.f32 %v116_v19, 100.0 }
  0x59   :  { %v121_v28 = vmin.f32 %v117_v21, 100.0  ;;  %v139_v29 = vmul.f32 %v135_v17, %v119_v22 }
  0x5a   :  { %v122_v30 = vmin.f32 %v118_v23, 100.0  ;;  %v140_v24 = vmul.f32 %v136_v20, %v120_v26 }
  0x5b   :  { %v141_v31 = vmul.f32 %v137_v25, %v121_v28 }
  0x5c   :  { %v142_v32 = vmul.f32 %v138_v27, %v122_v30  ;;  %v143_v33 = vadd.f32 %v140_v24, %v139_v29 }
  0x5e   :  { %v144_v34 = vadd.f32 %v143_v33, %v141_v31 }
  0x60   :  { %v145_v35 = vadd.f32 %v144_v34, %v142_v32 }
  0x62   :  { %146 = vst [vmem:[#allocation7] sm:$0xff] %v145_v35 }
  0x63   :  { %247 = shalt.err (!%p244_p6)
}
  0x64   :  { %s248_s10 = scalar_lea.hbm %s344_s2, 128 }
  0x65   :  { %p249_p7 = scmp.ne.s32.totalorder %s344_s2, %s248_s10  ;;  %p252_p8 = scmp.lt.u32.totalorder %s248_s10, %s344_s2 }
  0x67   :  { %p254_p9 = pnand %p252_p8, %p249_p7 }
  0x69   :  { %257 = shalt.err (!%p254_p9)
}
  0x6a   :  { %156 = dma.vmem_to_hbm [thread:$0]  %s154_s6, 128, %s344_s2, [#allocation4]  }
  0x6b   :  { %262 = dma.done.wait [#allocation4], 128  }
  0x6c   :  { %263 = vsyncadd [#allocation4], 4294967168 }
  0x6d   :  { %160 = vsyncpa [#allocation3], 1 }
  0x6e   :  { %161 = vsyncpa [#allocation6], 1 }
  0x6f   :  { %162 = vsyncpa [#allocation4], 1 }

</bundles_post_ra>
